<compile_context>
chip_gen: v7x
topology: tpu7x:2x2x1
jax: 0.10.0
libtpu: 0.0.40
codegen_flags: <defaults>
</compile_context>

<pallas_src>
import functools

import jax
import jax.numpy as jnp
from jax.experimental import pallas as pl
from jax.experimental.pallas import tpu as pltpu


# ------------------------------ tiling helper -------------------------------

def _tile(dim, cap, align):
    """Largest divisor of `dim` that is <= cap and a multiple of `align`.

    Falls back to the full dim (a block equal to the full array dim is always
    a legal TPU block shape)."""
    if dim <= cap:
        return dim
    t = (cap // align) * align
    while t >= align:
        if dim % t == 0:
            return t
        t -= align
    return dim


# --------------- fused multi-output linear (x @ W_t + b_t, t=0..n) ----------

def _fused_linear_kernel(x_ref, w_ref, b_ref, *rest, n_out):
    out_refs = rest[:n_out]
    acc_ref = rest[n_out]

    # K-reduction runs over grid axis 2; f32 accumulators live in VMEM scratch.
    @pl.when(pl.program_id(2) == 0)
    def _():
        acc_ref[...] = jnp.zeros_like(acc_ref)

    x = x_ref[...]                                    # (tm, tk) bf16, read once
    for t in range(n_out):                            # statically unrolled
        acc_ref[t] += jnp.dot(x, w_ref[t], preferred_element_type=jnp.float32)

    @pl.when(pl.program_id(2) == pl.num_programs(2) - 1)
    def _():
        for t in range(n_out):
            y = acc_ref[t] + b_ref[t]                 # (tm, tn) + (1, tn), f32
            out_refs[t][...] = y.astype(out_refs[t].dtype)


def fused_linear(x, w, b, *, out_dtype=jnp.bfloat16,
                 tm_cap=512, tn_cap=512, tk_cap=512):
    """x: (M, K) bf16; w: (n, K, N) bf16; b: (n, 1, N) f32.

    Returns n separate (M, N) arrays (x @ w[t] + b[t]) from a single tiled,
    software-pipelined pass over x (x is read from HBM once for all outputs).
    """
    M, K = x.shape
    n, _, N = w.shape
    tm = _tile(M, tm_cap, 16)      # bf16 sublane tile is (16, 128)
    tn = _tile(N, tn_cap, 128)
    tk = _tile(K, tk_cap, 128)
    grid = (M // tm, N // tn, K // tk)
    out = pl.pallas_call(
        functools.partial(_fused_linear_kernel, n_out=n),
        out_shape=tuple(jax.ShapeDtypeStruct((M, N), out_dtype) for _ in range(n)),
        grid=grid,
        in_specs=[
            pl.BlockSpec((tm, tk), lambda i, j, k: (i, k)),
            pl.BlockSpec((n, tk, tn), lambda i, j, k: (0, k, j)),
            pl.BlockSpec((n, 1, tn), lambda i, j, k: (0, 0, j)),
        ],
        out_specs=tuple(
            pl.BlockSpec((tm, tn), lambda i, j, k: (i, j)) for _ in range(n)),
        scratch_shapes=[pltpu.VMEM((n, tm, tn), jnp.float32)],
        compiler_params=pltpu.CompilerParams(
            dimension_semantics=("parallel", "parallel", "arbitrary"),
        ),
    )(x, w, b)
    return out if isinstance(out, (tuple, list)) else (out,)


# ------------------------- flash-style attention core ------------------------

def _flash_attn_kernel(q_ref, k_ref, v_ref, o_ref, m_ref, l_ref, acc_ref):
    ki = pl.program_id(2)

    @pl.when(ki == 0)
    def _():
        m_ref[...] = jnp.full(m_ref.shape, -jnp.inf, jnp.float32)
        l_ref[...] = jnp.zeros_like(l_ref)
        acc_ref[...] = jnp.zeros_like(acc_ref)

    q = q_ref[0]                                      # (tq, dh) bf16, pre-scaled by 1/sqrt(dh)
    k = k_ref[0]                                      # (tk, dh) bf16
    # QK^T without an explicit transpose: contract the last dims on the MXU.
    s = jax.lax.dot_general(q, k, (((1,), (1,)), ((), ())),
                            preferred_element_type=jnp.float32)   # (tq, tk) f32
    # TODO(synk): mask path (scores.masked_fill(mask == 0, -1e9)) goes here.

    m_prev = m_ref[...]
    m_new = jnp.maximum(m_prev, jnp.max(s, axis=-1, keepdims=True))
    alpha = jnp.exp(m_prev - m_new)                   # rescale of old partials
    p = jnp.exp(s - m_new)                            # unnormalized weights
    l_ref[...] = alpha * l_ref[...] + jnp.sum(p, axis=-1, keepdims=True)
    acc_ref[...] = alpha * acc_ref[...] + jnp.dot(
        p.astype(jnp.bfloat16), v_ref[0], preferred_element_type=jnp.float32)
    m_ref[...] = m_new

    @pl.when(ki == pl.num_programs(2) - 1)
    def _():
        # Deferred softmax normalization: one divide per (tq, dh) output, EUP.
        inv = pl.reciprocal(l_ref[...], approx=True)
        o_ref[0] = (acc_ref[...] * inv).astype(o_ref.dtype)


def attention_core(q, k, v, *, tq_cap=256, tk_cap=512):
    """q: (B*H, Sq, dh), k/v: (B*H, Sk, dh) -> softmax(q k^T) v, streamed over Sk.

    The 1/sqrt(dh) scale is already folded into q (see prepare_params).
    """
    BH, Sq, dh = q.shape
    Sk = k.shape[1]
    tq = _tile(Sq, tq_cap, 16)     # bf16 sublane alignment
    tk = _tile(Sk, tk_cap, 16)
    grid = (BH, Sq // tq, Sk // tk)
    return pl.pallas_call(
        _flash_attn_kernel,
        out_shape=jax.ShapeDtypeStruct((BH, Sq, dh), q.dtype),
        grid=grid,
        in_specs=[
            pl.BlockSpec((1, tq, dh), lambda b, qi, ki: (b, qi, 0)),
            pl.BlockSpec((1, tk, dh), lambda b, qi, ki: (b, ki, 0)),
            pl.BlockSpec((1, tk, dh), lambda b, qi, ki: (b, ki, 0)),
        ],
        out_specs=pl.BlockSpec((1, tq, dh), lambda b, qi, ki: (b, qi, 0)),
        scratch_shapes=[
            pltpu.VMEM((tq, 1), jnp.float32),      # running max
            pltpu.VMEM((tq, 1), jnp.float32),      # running sum
            pltpu.VMEM((tq, dh), jnp.float32),     # output accumulator
        ],
        compiler_params=pltpu.CompilerParams(
            # (B*H, Sq/tq) parallel -> megacore sharding + deep pipeline;
            # Sk axis is the streamed reduction.
            dimension_semantics=("parallel", "parallel", "arbitrary"),
        ),
    )(q, k, v)


# ------------------------------ parameter prep -------------------------------

def init_params(key, d_model, dtype=jnp.float32):
    """Raw nn.Linear-style parameters (f32), as in the PyTorch module."""
    ks = jax.random.split(key, 4)

    def lin(kw, din, dout):
        w = (jax.random.normal(kw, (din, dout), dtype) * 0.02).astype(dtype)
        b = jnp.zeros((1, dout), dtype)
        return w, b

    wq, bq = lin(ks[0], d_model, d_model)
    wk, bk = lin(ks[1], d_model, d_model)
    wv, bv = lin(ks[2], d_model, d_model)
    wo, bo = lin(ks[3], d_model, d_model)
    return dict(wq=wq, bq=bq, wk=wk, bk=bk, wv=wv, bv=bv, wo=wo, bo=bo)


def prepare_params(p, num_heads):
    """One-time prep: bf16 weight stacks in HBM (fused QKV / KV, no per-call
    concatenate) with 1/sqrt(dh) folded into the q projection."""
    d_model = p["wq"].shape[0]
    dh = d_model // num_heads
    scale = 1.0 / (dh ** 0.5)
    wq_s, bq_s = p["wq"] * scale, p["bq"] * scale

    sw = lambda ws: jnp.stack(ws, axis=0).astype(jnp.bfloat16)   # (n, D, D)
    sb = lambda bs: jnp.stack(bs, axis=0).astype(jnp.float32)    # (n, 1, D)
    return dict(
        w_qkv=sw([wq_s, p["wk"], p["wv"]]), b_qkv=sb([bq_s, p["bk"], p["bv"]]),
        w_kv=sw([p["wk"], p["wv"]]),        b_kv=sb([p["bk"], p["bv"]]),
        w_q=sw([wq_s]),    b_q=sb([bq_s]),
        w_k=sw([p["wk"]]), b_k=sb([p["bk"]]),
        w_v=sw([p["wv"]]), b_v=sb([p["bv"]]),
        w_o=sw([p["wo"]]), b_o=sb([p["bo"]]),
    )


# --------------------------- module-level wrapper ----------------------------

def multi_head_attention(pp, query, key, value, num_heads, mask=None):
    # TODO(synk): mask (masked_fill(mask == 0, -1e9) on scores) not wired in.
    B, Sq, D = query.shape
    Sk = key.shape[1]
    dh = D // num_heads

    xq = query.reshape(B * Sq, D).astype(jnp.bfloat16)
    if query is key and key is value:
        # Fused QKV projection: x read from HBM once, three bf16 outputs.
        q2d, k2d, v2d = fused_linear(xq, pp["w_qkv"], pp["b_qkv"])
    else:
        (q2d,) = fused_linear(xq, pp["w_q"], pp["b_q"])
        xkv = key.reshape(B * Sk, D).astype(jnp.bfloat16)
        if key is value:
            # Fused KV projection for shared key/value (cross-attention).
            k2d, v2d = fused_linear(xkv, pp["w_kv"], pp["b_kv"])
        else:
            (k2d,) = fused_linear(xkv, pp["w_k"], pp["b_k"])
            xv = value.reshape(B * Sk, D).astype(jnp.bfloat16)
            (v2d,) = fused_linear(xv, pp["w_v"], pp["b_v"])

    # Exact torch .view(B*H, -1, D//H) semantics: raw contiguous reshape
    # (free at the JAX level; NOT a transpose-based head split).
    q = q2d.reshape(B * num_heads, -1, dh)
    k = k2d.reshape(B * num_heads, -1, dh)
    v = v2d.reshape(B * num_heads, -1, dh)

    att = attention_core(q, k, v)                 # (B*H, Sq, dh) bf16
    att2d = att.reshape(B * Sq, D)                # torch .view(B, -1, D), free

    (out2d,) = fused_linear(att2d, pp["w_o"], pp["b_o"], out_dtype=query.dtype)
    return out2d.reshape(B, Sq, D)


# ------------------------------ JAX reference --------------------------------

def _ref_mha(p, query, key, value, num_heads):
    B, Sq, D = query.shape
    dh = D // num_heads
    q = query.reshape(-1, D) @ p["wq"] + p["bq"]
    k = key.reshape(-1, D) @ p["wk"] + p["bk"]
    v = value.reshape(-1, D) @ p["wv"] + p["bv"]
    q = q.reshape(B * num_heads, -1, dh)
    k = k.reshape(B * num_heads, -1, dh)
    v = v.reshape(B * num_heads, -1, dh)
    s = jnp.einsum("bqd,bkd->bqk", q, k) / (dh ** 0.5)
    w = jax.nn.softmax(s, axis=-1)
    a = jnp.einsum("bqk,bkd->bqd", w, v).reshape(B, -1, D)
    return (a.reshape(-1, D) @ p["wo"] + p["bo"]).reshape(B, Sq, D)


# ----------------------------------- main -------------------------------------

if __name__ == "__main__":
    num_heads, d_model = 4, 32
    B, S = 2, 8

    key = jax.random.PRNGKey(0)
    kp, kx, km, kv = jax.random.split(key, 4)

    params = init_params(kp, d_model)
    pp = prepare_params(params, num_heads)          # one-time bf16 weight prep

    x = jax.random.normal(kx, (B, S, d_model), jnp.float32)
    mem = jax.random.normal(km, (B, S, d_model), jnp.float32)
    val = jax.random.normal(kv, (B, S, d_model), jnp.float32)

    # self-attention (query is key is value -> fused QKV projection path)
    out_self = multi_head_attention(pp, x, x, x, num_heads)
    # cross-attention, shared key/value -> fused KV projection path
    out_cross = multi_head_attention(pp, x, mem, mem, num_heads)
    # fully separate key/value -> individual projection path
    out_sep = multi_head_attention(pp, x, mem, val, num_heads)
    out_self, out_cross, out_sep = jax.block_until_ready(
        (out_self, out_cross, out_sep))

    ref_self = _ref_mha(params, x, x, x, num_heads)
    ref_cross = _ref_mha(params, x, mem, mem, num_heads)
    ref_sep = _ref_mha(params, x, mem, val, num_heads)

    assert out_self.shape == (B, S, d_model)
    assert out_cross.shape == (B, S, d_model)
    assert out_sep.shape == (B, S, d_model)
    # bf16 HBM operands (f32 accumulation) + approx reciprocal vs f32 reference
    # -> relaxed tolerance.
    assert jnp.allclose(out_self, ref_self, atol=2e-2, rtol=2e-2), \
        "self-attention mismatch vs JAX reference"
    assert jnp.allclose(out_cross, ref_cross, atol=2e-2, rtol=2e-2), \
        "cross-attention mismatch vs JAX reference"
    assert jnp.allclose(out_sep, ref_sep, atol=2e-2, rtol=2e-2), \
        "separate-kv attention mismatch vs JAX reference"

    print("KERNEL_OK")
</pallas_src>

<mosaic_0001>
module attributes {stable_mosaic.version = 11 : i64} {
  func.func @_fused_linear_kernel(%arg0: i32, %arg1: i32, %arg2: i32, %arg3: memref<16x32xbf16, #tpu.memory_space<vmem>>, %arg4: memref<3x32x32xbf16, #tpu.memory_space<vmem>>, %arg5: memref<3x1x32xf32, #tpu.memory_space<vmem>>, %arg6: memref<16x32xbf16, #tpu.memory_space<vmem>>, %arg7: memref<16x32xbf16, #tpu.memory_space<vmem>>, %arg8: memref<16x32xbf16, #tpu.memory_space<vmem>>, %arg9: memref<3x16x32xf32, #tpu.memory_space<vmem>>) attributes {dimension_semantics = [#tpu.dimension_semantics<parallel>, #tpu.dimension_semantics<parallel>, #tpu.dimension_semantics<arbitrary>], iteration_bounds = array<i64: 1, 1, 1>, scalar_prefetch = 0 : i64, scratch_operands = 1 : i64, tpu.core_type = #tpu.core_type<tc>, window_params = [{transform_indices = @transform_0, window_bounds = array<i64: 16, 32>}, {transform_indices = @transform_1, window_bounds = array<i64: 3, 32, 32>}, {transform_indices = @transform_2, window_bounds = array<i64: 3, 1, 32>}, {transform_indices = @transform_3, window_bounds = array<i64: 16, 32>}, {transform_indices = @transform_4, window_bounds = array<i64: 16, 32>}, {transform_indices = @transform_5, window_bounds = array<i64: 16, 32>}]} {
    %c0_i32 = arith.constant 0 : i32
    %0 = arith.cmpi eq, %arg2, %c0_i32 : i32
    %1 = arith.extui %0 : i1 to i32
    %c0_i32_0 = arith.constant 0 : i32
    %2 = arith.cmpi ne, %1, %c0_i32_0 : i32
    scf.if %2 {
      %cst_31 = arith.constant 0.000000e+00 : f32
      %34 = vector.broadcast %cst_31 : f32 to vector<3x16x32xf32>
      %c0_32 = arith.constant 0 : index
      %c0_33 = arith.constant 0 : index
      %c0_34 = arith.constant 0 : index
      %35 = vector.load %arg9[%c0_32, %c0_33, %c0_34] : memref<3x16x32xf32, #tpu.memory_space<vmem>>, vector<3x16x32xf32>
      tpu.vector_store %arg9[%c0_32, %c0_33, %c0_34], %34 {strides = array<i32>} : memref<3x16x32xf32, #tpu.memory_space<vmem>>, vector<3x16x32xf32>,
    } else {
    }
    %c0 = arith.constant 0 : index
    %c0_1 = arith.constant 0 : index
    %3 = vector.load %arg3[%c0, %c0_1] : memref<16x32xbf16, #tpu.memory_space<vmem>>, vector<16x32xbf16>
    %c0_2 = arith.constant 0 : index
    %c0_3 = arith.constant 0 : index
    %c0_4 = arith.constant 0 : index
    %4 = vector.load %arg9[%c0_2, %c0_3, %c0_4] : memref<3x16x32xf32, #tpu.memory_space<vmem>>, vector<1x16x32xf32>
    %5 = vector.shape_cast %4 : vector<1x16x32xf32> to vector<16x32xf32>
    %c0_5 = arith.constant 0 : index
    %c0_6 = arith.constant 0 : index
    %c0_7 = arith.constant 0 : index
    %6 = vector.load %arg4[%c0_5, %c0_6, %c0_7] : memref<3x32x32xbf16, #tpu.memory_space<vmem>>, vector<1x32x32xbf16>
    %7 = vector.shape_cast %6 : vector<1x32x32xbf16> to vector<32x32xbf16>
    %cst = arith.constant dense<0.000000e+00> : vector<16x32xf32>
    %8 = tpu.matmul %3, %7, %cst {dimension_numbers = #tpu.dot_dimension_numbers<[1], [0], [0], [1], [0, 0, 1, 1], [], []>} : vector<16x32xbf16>, vector<32x32xbf16>, vector<16x32xf32> -> vector<16x32xf32>
    %9 = arith.addf %5, %8 : vector<16x32xf32>
    %c0_8 = arith.constant 0 : index
    %c0_9 = arith.constant 0 : index
    %c0_10 = arith.constant 0 : index
    %10 = vector.load %arg9[%c0_8, %c0_9, %c0_10] : memref<3x16x32xf32, #tpu.memory_space<vmem>>, vector<1x16x32xf32>
    %11 = vector.shape_cast %10 : vector<1x16x32xf32> to vector<16x32xf32>
    %12 = vector.shape_cast %9 : vector<16x32xf32> to vector<1x16x32xf32>
    tpu.vector_store %arg9[%c0_8, %c0_9, %c0_10], %12 {strides = array<i32>} : memref<3x16x32xf32, #tpu.memory_space<vmem>>, vector<1x16x32xf32>,
    %c1 = arith.constant 1 : index
    %c0_11 = arith.constant 0 : index
    %c0_12 = arith.constant 0 : index
    %13 = vector.load %arg9[%c1, %c0_11, %c0_12] : memref<3x16x32xf32, #tpu.memory_space<vmem>>, vector<1x16x32xf32>
    %14 = vector.shape_cast %13 : vector<1x16x32xf32> to vector<16x32xf32>
    %c1_13 = arith.constant 1 : index
    %c0_14 = arith.constant 0 : index
    %c0_15 = arith.constant 0 : index
    %15 = vector.load %arg4[%c1_13, %c0_14, %c0_15] : memref<3x32x32xbf16, #tpu.memory_space<vmem>>, vector<1x32x32xbf16>
    %16 = vector.shape_cast %15 : vector<1x32x32xbf16> to vector<32x32xbf16>
    %cst_16 = arith.constant dense<0.000000e+00> : vector<16x32xf32>
    %17 = tpu.matmul %3, %16, %cst_16 {dimension_numbers = #tpu.dot_dimension_numbers<[1], [0], [0], [1], [0, 0, 1, 1], [], []>} : vector<16x32xbf16>, vector<32x32xbf16>, vector<16x32xf32> -> vector<16x32xf32>
    %18 = arith.addf %14, %17 : vector<16x32xf32>
    %c1_17 = arith.constant 1 : index
    %c0_18 = arith.constant 0 : index
    %c0_19 = arith.constant 0 : index
    %19 = vector.load %arg9[%c1_17, %c0_18, %c0_19] : memref<3x16x32xf32, #tpu.memory_space<vmem>>, vector<1x16x32xf32>
    %20 = vector.shape_cast %19 : vector<1x16x32xf32> to vector<16x32xf32>
    %21 = vector.shape_cast %18 : vector<16x32xf32> to vector<1x16x32xf32>
    tpu.vector_store %arg9[%c1_17, %c0_18, %c0_19], %21 {strides = array<i32>} : memref<3x16x32xf32, #tpu.memory_space<vmem>>, vector<1x16x32xf32>,
    %c2 = arith.constant 2 : index
    %c0_20 = arith.constant 0 : index
    %c0_21 = arith.constant 0 : index
    %22 = vector.load %arg9[%c2, %c0_20, %c0_21] : memref<3x16x32xf32, #tpu.memory_space<vmem>>, vector<1x16x32xf32>
    %23 = vector.shape_cast %22 : vector<1x16x32xf32> to vector<16x32xf32>
    %c2_22 = arith.constant 2 : index
    %c0_23 = arith.constant 0 : index
    %c0_24 = arith.constant 0 : index
    %24 = vector.load %arg4[%c2_22, %c0_23, %c0_24] : memref<3x32x32xbf16, #tpu.memory_space<vmem>>, vector<1x32x32xbf16>
    %25 = vector.shape_cast %24 : vector<1x32x32xbf16> to vector<32x32xbf16>
    %cst_25 = arith.constant dense<0.000000e+00> : vector<16x32xf32>
    %26 = tpu.matmul %3, %25, %cst_25 {dimension_numbers = #tpu.dot_dimension_numbers<[1], [0], [0], [1], [0, 0, 1, 1], [], []>} : vector<16x32xbf16>, vector<32x32xbf16>, vector<16x32xf32> -> vector<16x32xf32>
    %27 = arith.addf %23, %26 : vector<16x32xf32>
    %c2_26 = arith.constant 2 : index
    %c0_27 = arith.constant 0 : index
    %c0_28 = arith.constant 0 : index
    %28 = vector.load %arg9[%c2_26, %c0_27, %c0_28] : memref<3x16x32xf32, #tpu.memory_space<vmem>>, vector<1x16x32xf32>
    %29 = vector.shape_cast %28 : vector<1x16x32xf32> to vector<16x32xf32>
    %30 = vector.shape_cast %27 : vector<16x32xf32> to vector<1x16x32xf32>
    tpu.vector_store %arg9[%c2_26, %c0_27, %c0_28], %30 {strides = array<i32>} : memref<3x16x32xf32, #tpu.memory_space<vmem>>, vector<1x16x32xf32>,
    %c0_i32_29 = arith.constant 0 : i32
    %31 = arith.cmpi eq, %arg2, %c0_i32_29 : i32
    %32 = arith.extui %31 : i1 to i32
    %c0_i32_30 = arith.constant 0 : i32
    %33 = arith.cmpi ne, %32, %c0_i32_30 : i32
    scf.if %33 {
      %c0_31 = arith.constant 0 : index
      %c0_32 = arith.constant 0 : index
      %c0_33 = arith.constant 0 : index
      %34 = vector.load %arg9[%c0_31, %c0_32, %c0_33] : memref<3x16x32xf32, #tpu.memory_space<vmem>>, vector<1x16x32xf32>
      %35 = vector.shape_cast %34 : vector<1x16x32xf32> to vector<16x32xf32>
      %c0_34 = arith.constant 0 : index
      %c0_35 = arith.constant 0 : index
      %c0_36 = arith.constant 0 : index
      %36 = vector.load %arg5[%c0_34, %c0_35, %c0_36] : memref<3x1x32xf32, #tpu.memory_space<vmem>>, vector<1x1x32xf32>
      %37 = vector.shape_cast %36 : vector<1x1x32xf32> to vector<1x32xf32>
      %38 = vector.broadcast %37 : vector<1x32xf32> to vector<16x32xf32>
      %39 = arith.addf %35, %38 : vector<16x32xf32>
      %40 = arith.truncf %39 : vector<16x32xf32> to vector<16x32xbf16>
      %c0_37 = arith.constant 0 : index
      %c0_38 = arith.constant 0 : index
      %41 = vector.load %arg6[%c0_37, %c0_38] : memref<16x32xbf16, #tpu.memory_space<vmem>>, vector<16x32xbf16>
      tpu.vector_store %arg6[%c0_37, %c0_38], %40 {strides = array<i32>} : memref<16x32xbf16, #tpu.memory_space<vmem>>, vector<16x32xbf16>,
      %c1_39 = arith.constant 1 : index
      %c0_40 = arith.constant 0 : index
      %c0_41 = arith.constant 0 : index
      %42 = vector.load %arg9[%c1_39, %c0_40, %c0_41] : memref<3x16x32xf32, #tpu.memory_space<vmem>>, vector<1x16x32xf32>
      %43 = vector.shape_cast %42 : vector<1x16x32xf32> to vector<16x32xf32>
      %c1_42 = arith.constant 1 : index
      %c0_43 = arith.constant 0 : index
      %c0_44 = arith.constant 0 : index
      %44 = vector.load %arg5[%c1_42, %c0_43, %c0_44] : memref<3x1x32xf32, #tpu.memory_space<vmem>>, vector<1x1x32xf32>
      %45 = vector.shape_cast %44 : vector<1x1x32xf32> to vector<1x32xf32>
      %46 = vector.broadcast %45 : vector<1x32xf32> to vector<16x32xf32>
      %47 = arith.addf %43, %46 : vector<16x32xf32>
      %48 = arith.truncf %47 : vector<16x32xf32> to vector<16x32xbf16>
      %c0_45 = arith.constant 0 : index
      %c0_46 = arith.constant 0 : index
      %49 = vector.load %arg7[%c0_45, %c0_46] : memref<16x32xbf16, #tpu.memory_space<vmem>>, vector<16x32xbf16>
      tpu.vector_store %arg7[%c0_45, %c0_46], %48 {strides = array<i32>} : memref<16x32xbf16, #tpu.memory_space<vmem>>, vector<16x32xbf16>,
      %c2_47 = arith.constant 2 : index
      %c0_48 = arith.constant 0 : index
      %c0_49 = arith.constant 0 : index
      %50 = vector.load %arg9[%c2_47, %c0_48, %c0_49] : memref<3x16x32xf32, #tpu.memory_space<vmem>>, vector<1x16x32xf32>
      %51 = vector.shape_cast %50 : vector<1x16x32xf32> to vector<16x32xf32>
      %c2_50 = arith.constant 2 : index
      %c0_51 = arith.constant 0 : index
      %c0_52 = arith.constant 0 : index
      %52 = vector.load %arg5[%c2_50, %c0_51, %c0_52] : memref<3x1x32xf32, #tpu.memory_space<vmem>>, vector<1x1x32xf32>
      %53 = vector.shape_cast %52 : vector<1x1x32xf32> to vector<1x32xf32>
      %54 = vector.broadcast %53 : vector<1x32xf32> to vector<16x32xf32>
      %55 = arith.addf %51, %54 : vector<16x32xf32>
      %56 = arith.truncf %55 : vector<16x32xf32> to vector<16x32xbf16>
      %c0_53 = arith.constant 0 : index
      %c0_54 = arith.constant 0 : index
      %57 = vector.load %arg8[%c0_53, %c0_54] : memref<16x32xbf16, #tpu.memory_space<vmem>>, vector<16x32xbf16>
      tpu.vector_store %arg8[%c0_53, %c0_54], %56 {strides = array<i32>} : memref<16x32xbf16, #tpu.memory_space<vmem>>, vector<16x32xbf16>,
    } else {
    }
    return
  }
  func.func @transform_0(%arg0: i32, %arg1: i32, %arg2: i32) -> (i32, i32) {
    %c0_i32 = arith.constant 0 : i32
    return %arg0, %arg2 : i32, i32
  }
  func.func @transform_1(%arg0: i32, %arg1: i32, %arg2: i32) -> (i32, i32, i32) {
    %c0_i32 = arith.constant 0 : i32
    %c0_i32_0 = arith.constant 0 : i32
    return %c0_i32, %arg2, %arg1 : i32, i32, i32
  }
  func.func @transform_2(%arg0: i32, %arg1: i32, %arg2: i32) -> (i32, i32, i32) {
    %c0_i32 = arith.constant 0 : i32
    %c0_i32_0 = arith.constant 0 : i32
    %c0_i32_1 = arith.constant 0 : i32
    return %c0_i32, %c0_i32_0, %arg1 : i32, i32, i32
  }
  func.func @transform_3(%arg0: i32, %arg1: i32, %arg2: i32) -> (i32, i32) {
    %c0_i32 = arith.constant 0 : i32
    return %arg0, %arg1 : i32, i32
  }
  func.func @transform_4(%arg0: i32, %arg1: i32, %arg2: i32) -> (i32, i32) {
    %c0_i32 = arith.constant 0 : i32
    return %arg0, %arg1 : i32, i32
  }
  func.func @transform_5(%arg0: i32, %arg1: i32, %arg2: i32) -> (i32, i32) {
    %c0_i32 = arith.constant 0 : i32
    return %arg0, %arg1 : i32, i32
  }
}

</mosaic_0001>

<bundles_post_ra>
// kernel: tpu_custom_call.1
= control target key start
LH: loop header
LB: loop body
LE: loop exit
PB: predicated region body
PF: predicated region fallthrough
CT: control target
= control target key end

     0   :  { %11 = vsyncpa [#allocation4], 0  ;;  %s729_s0 = inlined_call_operand.hbm [shape: bf16[16,32], index: 0, kind: input, shape index: {}]   ;;  %s730_s1 = inlined_call_operand.hbm [shape: bf16[3,32,32], index: 1, kind: input, shape index: {}]   ;;  %s731_s2 = inlined_call_operand.vmem [shape: f32[3,1,32], index: 2, kind: input, shape index: {}]   ;;  %s732_s3 = inlined_call_operand.hbm [shape: bf16[16,32], index: 3, kind: output, shape index: {0}]   ;;  %s733_s4 = inlined_call_operand.hbm [shape: bf16[16,32], index: 4, kind: output, shape index: {1}]   ;;  %s734_s5 = inlined_call_operand.hbm [shape: bf16[16,32], index: 5, kind: output, shape index: {2}]  }
   0x1   :  { %12 = vsyncpa [#allocation7], 0 }
   0x2   :  { %13 = vsyncpa [#allocation5], 0 }
   0x3   :  { %14 = vsyncpa [#allocation10], 0  ;;  %s575_s18 = smov [#allocation3]   ;;  %s457_s22 = scalar_lea.hbm %s729_s0, 128 }
   0x4   :  { %s20_s19 = sshll.u32 %s575_s18, 4  ;;  %p458_p0 = scmp.ne.s32.totalorder %s729_s0, %s457_s22  ;;  %s21_s19 = int_to_ptr.vmem [resolvable:$true] %s20_s19 }
   0x5   :  { %p461_p1 = scmp.lt.u32.totalorder %s457_s22, %s729_s0 }
   0x7   :  { %p463_p2 = pnand %p461_p1, %p458_p0 }
   0x9   :  { %466 = shalt.err (!%p463_p2)
}
   0xa   :  { %s467_s27 = scalar_lea.vmem %s21_s19, 128  ;;  %p472_p4 = scmp.lt.s32.totalorder %s21_s19, %s21_s19 }
   0xb   :  { %p468_p3 = scmp.ne.s32.totalorder %s21_s19, %s467_s27  ;;  %p473_p5 = scmp.lt.s32.totalorder %s467_s27, %s467_s27 }
   0xd   :  { %p474_p6 = por %p473_p5, %p472_p4 }
   0xf   :  { %p475_p7 = pnand %p474_p6, %p468_p3 }
  0x11   :  { %478 = shalt.err (!%p475_p7)
}
  0x12   :  { %s576_s28 = smov 64   ;;  %s577_s29 = smov 4  }
  0x13   :  { %26 = dma.hbm_to_vmem [thread:$0]  %s729_s0, 128, %s21_s19, [#allocation4], %s576_s28, %s576_s28, %s577_s29  }
  0x14   :  { %s578_s7 = smov [#allocation6]   ;;  %s479_s11 = scalar_lea.hbm %s730_s1, 768 }
  0x15   :  { %s32_s8 = sshll.u32 %s578_s7, 4  ;;  %p480_p8 = scmp.ne.s32.totalorder %s730_s1, %s479_s11  ;;  %s33_s8 = int_to_ptr.vmem [resolvable:$true] %s32_s8 }
  0x16   :  { %p483_p9 = scmp.lt.u32.totalorder %s479_s11, %s730_s1 }
  0x18   :  { %p485_p10 = pnand %p483_p9, %p480_p8 }
  0x1a   :  { %488 = shalt.err (!%p485_p10)
}
  0x1b   :  { %s489_s16 = scalar_lea.vmem %s33_s8, 768  ;;  %p494_p12 = scmp.lt.s32.totalorder %s33_s8, %s33_s8 }
  0x1c   :  { %p490_p11 = scmp.ne.s32.totalorder %s33_s8, %s489_s16  ;;  %p495_p13 = scmp.lt.s32.totalorder %s489_s16, %s489_s16 }
  0x1e   :  { %p496_p0 = por %p495_p13, %p494_p12 }
  0x20   :  { %p497_p1 = pnand %p496_p0, %p490_p11 }
  0x22   :  { %500 = shalt.err (!%p497_p1)
}
  0x23   :  { %38 = dma.hbm_to_vmem [thread:$0]  %s730_s1, 768, %s33_s8, [#allocation7], %s576_s28, %s576_s28, %s577_s29  }
  0x24   :  { %567 = dma.done.wait [#allocation4], 128  }
  0x25   :  { %568 = vsyncadd [#allocation4], 4294967168 }
  0x26   :  { %569 = dma.done.wait [#allocation7], 768  }
  0x27   :  { %570 = vsyncadd [#allocation7], 4294966528  ;;  %vm52_vm0 = vcmask 261120   ;;  %v579_v0 = vmov 0.0   ;;  %vm580_vm1 = vmmov 0   ;;  %v450_v1 = vld [vmem:[#allocation6] sm:$0xff]  }
  0x28   :  { %417 = vmatprep.subr.bf16.mxu0 %v579_v0  ;;  %425 = vmatprep.subr.bf16.mxu1 %v579_v0  ;;  %53 = vst.msk [vmem:[#allocation2] sm:$0xff] %vm52_vm0, %v579_v0  ;;  %54 = vst.msk [vmem:[#allocation2 + $0x8] sm:$0xff] %vm52_vm0, %v579_v0  ;;  %v451_v2 = vld [vmem:[#allocation6 + $0x8] sm:$0xff]   ;;  %v452_v3 = vld [vmem:[#allocation6 + $0x10] sm:$0xff]   ;;  %vm285_vm2 = vcmask 257024   ;;  %s581_s21 = smov [#allocation8]  }
  0x29   :  { %55 = vst.msk [vmem:[#allocation2 + $0x10] sm:$0xff] %vm52_vm0, %v579_v0  ;;  %56 = vst.msk [vmem:[#allocation2 + $0x18] sm:$0xff] %vm52_vm0, %v579_v0  ;;  %421 = vmatprep.mubr.msk.bf16.mxu0 %vm580_vm1, %v579_v0  ;;  %429 = vmatprep.mubr.msk.bf16.mxu1 %vm580_vm1, %v579_v0  ;;  %v453_v4 = vld [vmem:[#allocation3] sm:$0xff]   ;;  %v454_v6 = vld [vmem:[#allocation6 + $0x20] sm:$0xff]   ;;  %s337_s22 = sshll.u32 %s581_s21, 4  ;;  %s582_s23 = smov [#allocation9]   ;;  %s338_s22 = int_to_ptr.vmem [resolvable:$true] %s337_s22 }
  0x2a   :  { %57 = vst.msk [vmem:[#allocation2 + $0x20] sm:$0xff] %vm52_vm0, %v579_v0  ;;  %58 = vst.msk [vmem:[#allocation2 + $0x28] sm:$0xff] %vm52_vm0, %v579_v0  ;;  %418 = vmatpush3.bf16.msra.mxu0 %v450_v1  ;;  %426 = vmatpush3.bf16.msra.mxu1 %v452_v3  ;;  %v455_v5 = vld [vmem:[#allocation6 + $0x18] sm:$0xff]   ;;  %v456_v7 = vld [vmem:[#allocation6 + $0x28] sm:$0xff]   ;;  %s349_s24 = sshll.u32 %s582_s23, 4  ;;  %s501_s27 = scalar_lea.vmem %s338_s22, 128  ;;  %s673_s24 = int_to_ptr.vmem [resolvable:$true] %s349_s24 }
  0x2b   :  { %419 = vmatprep.subr.bf16.mxu0 %v579_v0  ;;  %427 = vmatprep.subr.bf16.mxu1 %v579_v0  ;;  %v391_v27 = vld [vmem:[%s731_s2] ss:$0 sm:$0xff]  ;;  %v395_v31 = vld [vmem:[%s731_s2 + $0x1] ss:$0 sm:$0xff]  ;;  %v399_v45 = vld [vmem:[%s731_s2 + $0x2] ss:$0 sm:$0xff]  ;;  %p502_p2 = scmp.ne.s32.totalorder %s338_s22, %s501_s27  ;;  %p506_p3 = scmp.lt.s32.totalorder %s338_s22, %s338_s22 }
  0x2c   :  { %p507_p4 = scmp.lt.s32.totalorder %s501_s27, %s501_s27 }
  0x2e   :  { %420 = vmatpush3.bf16.msra.mxu0 %v451_v2  ;;  %428 = vmatpush3.bf16.msra.mxu1 %v455_v5  ;;  %p508_p5 = por %p507_p4, %p506_p3 }
  0x2f   :  { %433 = vmatprep.subr.bf16.mxu0 %v579_v0  ;;  %v61_v8 = vld [vmem:[#allocation2] sm:$0xff]  ;;  %v62_v10 = vld [vmem:[#allocation2 + $0x8] sm:$0xff] }
  0x30   :  { %v134_v11 = vld [vmem:[#allocation2 + $0x10] sm:$0xff]  ;;  %v135_v16 = vld [vmem:[#allocation2 + $0x18] sm:$0xff]  ;;  %p509_p6 = pnand %p508_p5, %p502_p2 }
  0x31   :  { %422 = vmatmul.mubr.msk.bf16.vlgmr.msra.gmra.mrb[0].mxu0 %vm52_vm0, %v453_v4  ;;  %430 = vmatmul.mubr.msk.bf16.vlgmr.msra.gmra.mrb[0].mxu1 %vm52_vm0, %v453_v4  ;;  %v199_v24 = vld [vmem:[#allocation2 + $0x20] sm:$0xff]  ;;  %v200_v26 = vld [vmem:[#allocation2 + $0x28] sm:$0xff] }
  0x32   :  { %434 = vmatpush3.bf16.msra.mxu0 %v454_v6  ;;  %437 = vmatprep.mubr.msk.bf16.mxu0 %vm580_vm1, %v579_v0 }
  0x33   :  { %435 = vmatprep.subr.bf16.mxu0 %v579_v0 }
  0x36   :  { %436 = vmatpush3.bf16.msra.mxu0 %v456_v7 }
  0x39   :  { %438 = vmatmul.mubr.msk.bf16.vlgmr.msra.gmra.mrb[4].mxu0 %vm52_vm0, %v453_v4 }
 0x104   :  { %v122_v9 = vpop.f32.mrb[0].mxu0  ;;  %v187_v15 = vpop.f32.mrb[0].mxu1 }
 0x105   :  { %v129_v12 = vadd.f32 %v122_v9, %v61_v8  ;;  %v423_v13 = vpop.f32.mrb[1].mxu0  ;;  %v194_v19 = vadd.f32 %v187_v15, %v134_v11  ;;  %v431_v20 = vpop.f32.mrb[1].mxu1 }
 0x106   :  { %v125_v14 = vpop.f32.mrb[2].mxu0  ;;  %v190_v21 = vpop.f32.mrb[2].mxu1 }
 0x107   :  { %131 = vst.msk [vmem:[#allocation2] sm:$0xff] %vm52_vm0, %v129_v12  ;;  %v130_v17 = vadd.f32 %v125_v14, %v62_v10  ;;  %v424_v18 = vpop.f32.mrb[3].mxu0  ;;  %196 = vst.msk [vmem:[#allocation2 + $0x10] sm:$0xff] %vm52_vm0, %v194_v19  ;;  %v195_v22 = vadd.f32 %v190_v21, %v135_v16  ;;  %v432_v23 = vpop.f32.mrb[3].mxu1 }
 0x109   :  { %132 = vst.msk [vmem:[#allocation2 + $0x8] sm:$0xff] %vm52_vm0, %v130_v17  ;;  %197 = vst.msk [vmem:[#allocation2 + $0x18] sm:$0xff] %vm52_vm0, %v195_v22 }
 0x10c   :  { %v252_v25 = vpop.f32.mrb[4].mxu0 }
 0x10d   :  { %v259_v28 = vadd.f32 %v252_v25, %v199_v24  ;;  %v439_v29 = vpop.f32.mrb[5].mxu0 }
 0x10e   :  { %v255_v30 = vpop.f32.mrb[6].mxu0  ;;  %v266_v32 = vld [vmem:[#allocation2] sm:$0xff]  ;;  %v288_v36 = vld [vmem:[#allocation2 + $0x10] sm:$0xff] }
 0x10f   :  { %261 = vst.msk [vmem:[#allocation2 + $0x20] sm:$0xff] %vm52_vm0, %v259_v28  ;;  %v260_v33 = vadd.f32 %v255_v30, %v200_v26  ;;  %v440_v34 = vpop.f32.mrb[7].mxu0  ;;  %v275_v35 = vadd.f32 %v391_v27, %v266_v32  ;;  %v298_v38 = vadd.f32 %v395_v31, %v288_v36 }
 0x110   :  { %v267_v37 = vld [vmem:[#allocation2 + $0x8] sm:$0xff]  ;;  %v289_v41 = vld [vmem:[#allocation2 + $0x18] sm:$0xff] }
 0x111   :  { %262 = vst.msk [vmem:[#allocation2 + $0x28] sm:$0xff] %vm52_vm0, %v260_v33  ;;  %v276_v39 = vadd.f32 %v391_v27, %v267_v37  ;;  %v402_v40 = vpack.c.bf16 %v275_v35, %v275_v35  ;;  %v299_v42 = vadd.f32 %v395_v31, %v289_v41  ;;  %v404_v43 = vpack.c.bf16 %v298_v38, %v298_v38 }
 0x113   :  { %v403_v44 = vpack.c.bf16 %v276_v39, %v276_v39  ;;  %286 = vst.msk [vmem:[#allocation8] sm:$0xf] %vm285_vm2, %v402_v40  ;;  %v405_v46 = vpack.c.bf16 %v299_v42, %v299_v42  ;;  %308 = vst.msk [vmem:[#allocation9] sm:$0xf] %vm285_vm2, %v404_v43 }
 0x115   :  { %287 = vst.msk [vmem:[#allocation8 + $0x4] sm:$0xf] %vm285_vm2, %v403_v44 }
 0x116   :  { %512 = shalt.err (!%p509_p6)
}
 0x117   :  { %s513_s7 = scalar_lea.hbm %s732_s3, 128 }
 0x118   :  { %p514_p7 = scmp.ne.s32.totalorder %s732_s3, %s513_s7  ;;  %p517_p8 = scmp.lt.u32.totalorder %s513_s7, %s732_s3 }
 0x11a   :  { %p519_p9 = pnand %p517_p8, %p514_p7 }
 0x11c   :  { %522 = shalt.err (!%p519_p9)
}
 0x11d   :  { %343 = dma.vmem_to_hbm [thread:$0]  %s338_s22, 128, %s732_s3, [#allocation5], %s576_s28, %s576_s28, %s577_s29   ;;  %v310_v47 = vld [vmem:[#allocation2 + $0x20] sm:$0xff]  ;;  %309 = vst.msk [vmem:[#allocation9 + $0x4] sm:$0xf] %vm285_vm2, %v405_v46 }
 0x11e   :  { %v320_v48 = vadd.f32 %v399_v45, %v310_v47  ;;  %s583_s13 = smov [#allocation11]   ;;  %s523_s15 = scalar_lea.vmem %s673_s24, 128 }
 0x11f   :  { %s361_s14 = sshll.u32 %s583_s13, 4  ;;  %p524_p10 = scmp.ne.s32.totalorder %s673_s24, %s523_s15  ;;  %s362_s14 = int_to_ptr.vmem [resolvable:$true] %s361_s14 }
 0x120   :  { %p528_p11 = scmp.lt.s32.totalorder %s673_s24, %s673_s24  ;;  %p529_p12 = scmp.lt.s32.totalorder %s523_s15, %s523_s15 }
 0x122   :  { %p530_p13 = por %p529_p12, %p528_p11 }
 0x124   :  { %p531_p0 = pnand %p530_p13, %p524_p10 }
 0x126   :  { %534 = shalt.err (!%p531_p0)
}
 0x127   :  { %s535_s17 = scalar_lea.hbm %s733_s4, 128 }
 0x128   :  { %p536_p1 = scmp.ne.s32.totalorder %s733_s4, %s535_s17  ;;  %p539_p2 = scmp.lt.u32.totalorder %s535_s17, %s733_s4 }
 0x12a   :  { %p541_p3 = pnand %p539_p2, %p536_p1 }
 0x12c   :  { %544 = shalt.err (!%p541_p3)
}
 0x12d   :  { %355 = dma.vmem_to_hbm [thread:$0]  %s673_s24, 128, %s733_s4, [#allocation10], %s576_s28, %s576_s28, %s577_s29   ;;  %v311_v49 = vld [vmem:[#allocation2 + $0x28] sm:$0xff]  ;;  %v406_v51 = vpack.c.bf16 %v320_v48, %v320_v48 }
 0x12e   :  { %v321_v50 = vadd.f32 %v399_v45, %v311_v49  ;;  %s545_s22 = scalar_lea.vmem %s362_s14, 128  ;;  %p550_p5 = scmp.lt.s32.totalorder %s362_s14, %s362_s14 }
 0x12f   :  { %330 = vst.msk [vmem:[#allocation11] sm:$0xf] %vm285_vm2, %v406_v51  ;;  %p546_p4 = scmp.ne.s32.totalorder %s362_s14, %s545_s22  ;;  %p551_p6 = scmp.lt.s32.totalorder %s545_s22, %s545_s22 }
 0x130   :  { %v407_v52 = vpack.c.bf16 %v321_v50, %v321_v50 }
 0x131   :  { %p552_p7 = por %p551_p6, %p550_p5 }
 0x132   :  { %331 = vst.msk [vmem:[#allocation11 + $0x4] sm:$0xf] %vm285_vm2, %v407_v52 }
 0x133   :  { %p553_p8 = pnand %p552_p7, %p546_p4 }
 0x135   :  { %556 = shalt.err (!%p553_p8)
}
 0x136   :  { %s557_s4 = scalar_lea.hbm %s734_s5, 128 }
 0x137   :  { %p558_p9 = scmp.ne.s32.totalorder %s734_s5, %s557_s4  ;;  %p561_p10 = scmp.lt.u32.totalorder %s557_s4, %s734_s5 }
 0x139   :  { %p563_p11 = pnand %p561_p10, %p558_p9 }
 0x13b   :  { %566 = shalt.err (!%p563_p11)
}
 0x13c   :  { %367 = dma.vmem_to_hbm [thread:$0]  %s362_s14, 128, %s734_s5, [#allocation10], %s576_s28, %s576_s28, %s577_s29  }
 0x13d   :  { %571 = dma.done.wait [#allocation5], 128  }
 0x13e   :  { %572 = vsyncadd [#allocation5], 4294967168 }
 0x13f   :  { %573 = dma.done.wait [#allocation10], 256  }
 0x140   :  { %574 = vsyncadd [#allocation10], 4294967040 }
 0x141   :  { %377 = vsyncpa [#allocation4], 1 }
 0x142   :  { %378 = vsyncpa [#allocation7], 1 }
 0x143   :  { %379 = vsyncpa [#allocation5], 1 }
 0x144   :  { %380 = vsyncpa [#allocation10], 1 }

</bundles_post_ra>
